<compile_context>
chip_gen: v6e
topology: v6e:2x2x1
jax: 0.10.0
libtpu: 0.0.40
codegen_flags: <defaults>
</compile_context>

<pallas_src>
import functools

import jax
import jax.numpy as jnp
from jax.experimental import pallas as pl
from jax.experimental.pallas import tpu as pltpu

LANE = 128
SUBLANE = 8


def _round_up(v, m):
    return ((v + m - 1) // m) * m


def _d3qn_kernel(x_ref,
                 w1_ref, b1_ref, w2_ref, b2_ref,      # feature net (padded)
                 wh1_ref, bh1_ref, wh2_ref, bh2_ref,  # fused adv/value heads
                 o_ref, *, n_actions):
    # Matmuls run in the weights' compute dtype (bf16 or f32) with f32
    # accumulation; bias add / ReLU / dueling combine stay in f32.
    x = x_ref[...]

    # feature_net: Linear -> ReLU -> Linear
    h = jnp.dot(x, w1_ref[...], preferred_element_type=jnp.float32) + b1_ref[...]
    h = jnp.maximum(h, 0.0)
    feat = (jnp.dot(h.astype(w2_ref.dtype), w2_ref[...],
                    preferred_element_type=jnp.float32) + b2_ref[...])

    # fused heads: one matmul -> [ha | hv | 0], ReLU, one block-diagonal
    # matmul -> [adv | val | 0]  (all lane-dense, 128-wide).
    hh = (jnp.dot(feat.astype(wh1_ref.dtype), wh1_ref[...],
                  preferred_element_type=jnp.float32) + bh1_ref[...])
    hh = jnp.maximum(hh, 0.0)
    head = (jnp.dot(hh.astype(wh2_ref.dtype), wh2_ref[...],
                    preferred_element_type=jnp.float32) + bh2_ref[...])

    # dueling combine (f32). Output written as a lane-dense (TB, 128) slab;
    # the wrapper slices the first n_actions columns.
    adv = head[:, :n_actions]
    val = head[:, n_actions:n_actions + 1]
    adv_mean = jnp.mean(adv, axis=-1, keepdims=True)
    o_ref[...] = (val + (head - adv_mean)).astype(o_ref.dtype)


def d3qn_forward(x, packed, n_actions, *,
                 compute_dtype=jnp.bfloat16, batch_tile=256):
    """x: (B, F) float32. Returns q_values: (B, n_actions) float32."""
    B, F = x.shape
    HP = packed["w1"].shape[1]
    KP = packed["wh1"].shape[1]
    OP = packed["wh2"].shape[1]

    # Batch tile: multiple of the 8-sublane granule; small batches use one tile.
    # TB=256 keeps the double-buffered (TB, OP) f32 output tile tiny relative
    # to even v7x's 64 MiB VMEM.
    TB = min(batch_tile, _round_up(B, SUBLANE))
    B_pad = _round_up(B, TB)

    x_pad = x if B_pad == B else jnp.pad(x, ((0, B_pad - B), (0, 0)))
    x_pad = x_pad.astype(compute_dtype)

    # Weights in compute dtype (bf16 by default), biases stay f32.
    w1 = packed["w1"].astype(compute_dtype)
    w2 = packed["w2"].astype(compute_dtype)
    wh1 = packed["wh1"].astype(compute_dtype)
    wh2 = packed["wh2"].astype(compute_dtype)
    b1, b2, bh1, bh2 = packed["b1"], packed["b2"], packed["bh1"], packed["bh2"]

    grid = (B_pad // TB,)
    const = lambda i: (0, 0)   # weights: resident in VMEM across grid steps

    itemsize = jnp.dtype(compute_dtype).itemsize
    flops = 2 * B_pad * (F * HP + HP * HP + HP * KP + KP * OP)
    bytes_accessed = (x_pad.size * itemsize
                      + (w1.size + w2.size + wh1.size + wh2.size) * itemsize
                      + (b1.size + b2.size + bh1.size + bh2.size) * 4
                      + B_pad * OP * 4)

    out_pad = pl.pallas_call(
        functools.partial(_d3qn_kernel, n_actions=n_actions),
        out_shape=jax.ShapeDtypeStruct((B_pad, OP), jnp.float32),
        grid=grid,
        in_specs=[
            pl.BlockSpec((TB, F), lambda i: (i, 0)),
            pl.BlockSpec((F, HP), const), pl.BlockSpec((1, HP), const),
            pl.BlockSpec((HP, HP), const), pl.BlockSpec((1, HP), const),
            pl.BlockSpec((HP, KP), const), pl.BlockSpec((1, KP), const),
            pl.BlockSpec((KP, OP), const), pl.BlockSpec((1, OP), const),
        ],
        out_specs=pl.BlockSpec((TB, OP), lambda i: (i, 0)),
        compiler_params=pltpu.CompilerParams(
            dimension_semantics=("parallel",)),
        cost_estimate=pl.CostEstimate(flops=flops, transcendentals=0,
                                      bytes_accessed=bytes_accessed),
    )(x_pad, w1, b1, w2, b2, wh1, bh1, wh2, bh2)

    return out_pad[:B, :n_actions]


def _linear_params(key, fan_in, fan_out):
    """Deterministic PyTorch-style Linear init: U(-1/sqrt(fan_in), 1/sqrt(fan_in))."""
    kw, kb = jax.random.split(key)
    bound = 1.0 / jnp.sqrt(jnp.float32(fan_in))
    w = jax.random.uniform(kw, (fan_in, fan_out), jnp.float32, -bound, bound)
    b = jax.random.uniform(kb, (1, fan_out), jnp.float32, -bound, bound)
    return w, b


def init_d3qn_params(key, input_shape, rnn_hidden_dim, n_actions):
    """Returns (packed, raw): lane-padded fused params for the kernel, plus the
    original unpadded params for the pure-JAX reference."""
    F, H, A = input_shape, rnn_hidden_dim, n_actions
    Hh = H // 2
    keys = jax.random.split(key, 6)
    w1, b1 = _linear_params(keys[0], F, H)
    w2, b2 = _linear_params(keys[1], H, H)
    wa1, ba1 = _linear_params(keys[2], H, Hh)
    wa2, ba2 = _linear_params(keys[3], Hh, A)
    wv1, bv1 = _linear_params(keys[4], H, Hh)
    wv2, bv2 = _linear_params(keys[5], Hh, 1)

    raw = dict(w1=w1, b1=b1, w2=w2, b2=b2,
               wa1=wa1, ba1=ba1, wa2=wa2, ba2=ba2,
               wv1=wv1, bv1=bv1, wv2=wv2, bv2=bv2)

    HP = _round_up(H, LANE)          # padded feature width
    KP = _round_up(2 * Hh, LANE)     # padded fused head-hidden width
    OP = _round_up(A + 1, LANE)      # padded [adv | val] output width

    # Zero-padded columns stay exactly 0 through bias/ReLU and the matching
    # zero rows in the next weight contribute nothing, so semantics are exact.
    pw1 = jnp.zeros((F, HP), jnp.float32).at[:, :H].set(w1)
    pb1 = jnp.zeros((1, HP), jnp.float32).at[:, :H].set(b1)
    pw2 = jnp.zeros((HP, HP), jnp.float32).at[:H, :H].set(w2)
    pb2 = jnp.zeros((1, HP), jnp.float32).at[:, :H].set(b2)
    # fused head layer 1: columns [0,Hh) = advantage hidden, [Hh,2Hh) = value hidden
    pwh1 = (jnp.zeros((HP, KP), jnp.float32)
            .at[:H, :Hh].set(wa1)
            .at[:H, Hh:2 * Hh].set(wv1))
    pbh1 = (jnp.zeros((1, KP), jnp.float32)
            .at[:, :Hh].set(ba1)
            .at[:, Hh:2 * Hh].set(bv1))
    # fused head layer 2 (block-diagonal): output cols [0,A) = adv, col A = val
    pwh2 = (jnp.zeros((KP, OP), jnp.float32)
            .at[:Hh, :A].set(wa2)
            .at[Hh:2 * Hh, A:A + 1].set(wv2))
    pbh2 = (jnp.zeros((1, OP), jnp.float32)
            .at[:, :A].set(ba2)
            .at[:, A:A + 1].set(bv2))

    packed = dict(w1=pw1, b1=pb1, w2=pw2, b2=pb2,
                  wh1=pwh1, bh1=pbh1, wh2=pwh2, bh2=pbh2)
    return packed, raw


def d3qn_reference(x, p):
    """Pure-JAX f32 reference matching the PyTorch forward semantics."""
    h = jnp.maximum(x @ p["w1"] + p["b1"], 0.0)
    feat = h @ p["w2"] + p["b2"]
    ha = jnp.maximum(feat @ p["wa1"] + p["ba1"], 0.0)
    adv = ha @ p["wa2"] + p["ba2"]
    hv = jnp.maximum(feat @ p["wv1"] + p["bv1"], 0.0)
    val = hv @ p["wv2"] + p["bv2"]
    return val + (adv - adv.mean(axis=-1, keepdims=True))


if __name__ == "__main__":
    # Small, deterministic shapes consistent with the module:
    #   input_shape=16, args.rnn_hidden_dim=32, args.n_actions=8, batch=8
    B, F_IN, H, A = 8, 16, 32, 8

    key = jax.random.PRNGKey(0)
    k_x, k_p = jax.random.split(key)
    x = jax.random.normal(k_x, (B, F_IN), jnp.float32)
    packed, raw = init_d3qn_params(k_p, F_IN, H, A)

    q_ref = d3qn_reference(x, raw)

    # f32 matmul path: must match the reference tightly.
    q_f32 = jax.block_until_ready(
        d3qn_forward(x, packed, A, compute_dtype=jnp.float32))
    assert q_f32.shape == (B, A)
    assert jnp.allclose(q_f32, q_ref, atol=1e-4, rtol=1e-4), "f32 mismatch vs reference"

    # bf16 matmul path (default; preferred on v6e/v7x): looser tolerance.
    q_bf16 = jax.block_until_ready(d3qn_forward(x, packed, A))
    assert q_bf16.shape == (B, A)
    assert jnp.allclose(q_bf16, q_ref, atol=5e-2, rtol=5e-2), "bf16 mismatch vs reference"

    print("KERNEL_OK")
</pallas_src>

<mosaic_0001>
module attributes {stable_mosaic.version = 11 : i64} {
  func.func @_d3qn_kernel(%arg0: i32, %arg1: memref<8x16xf32, #tpu.memory_space<vmem>>, %arg2: memref<16x128xf32, #tpu.memory_space<vmem>>, %arg3: memref<1x128xf32, #tpu.memory_space<vmem>>, %arg4: memref<128x128xf32, #tpu.memory_space<vmem>>, %arg5: memref<1x128xf32, #tpu.memory_space<vmem>>, %arg6: memref<128x128xf32, #tpu.memory_space<vmem>>, %arg7: memref<1x128xf32, #tpu.memory_space<vmem>>, %arg8: memref<128x128xf32, #tpu.memory_space<vmem>>, %arg9: memref<1x128xf32, #tpu.memory_space<vmem>>, %arg10: memref<8x128xf32, #tpu.memory_space<vmem>>) attributes {dimension_semantics = [#tpu.dimension_semantics<parallel>], iteration_bounds = array<i64: 1>, scalar_prefetch = 0 : i64, scratch_operands = 0 : i64, tpu.core_type = #tpu.core_type<tc>, window_params = [{transform_indices = @transform_0, window_bounds = array<i64: 8, 16>}, {pipeline_mode = #tpu.pipeline_mode<synchronous>, transform_indices = @transform_1, window_bounds = array<i64: 16, 128>}, {pipeline_mode = #tpu.pipeline_mode<synchronous>, transform_indices = @transform_2, window_bounds = array<i64: 1, 128>}, {pipeline_mode = #tpu.pipeline_mode<synchronous>, transform_indices = @transform_3, window_bounds = array<i64: 128, 128>}, {pipeline_mode = #tpu.pipeline_mode<synchronous>, transform_indices = @transform_4, window_bounds = array<i64: 1, 128>}, {pipeline_mode = #tpu.pipeline_mode<synchronous>, transform_indices = @transform_5, window_bounds = array<i64: 128, 128>}, {pipeline_mode = #tpu.pipeline_mode<synchronous>, transform_indices = @transform_6, window_bounds = array<i64: 1, 128>}, {pipeline_mode = #tpu.pipeline_mode<synchronous>, transform_indices = @transform_7, window_bounds = array<i64: 128, 128>}, {pipeline_mode = #tpu.pipeline_mode<synchronous>, transform_indices = @transform_8, window_bounds = array<i64: 1, 128>}, {transform_indices = @transform_9, window_bounds = array<i64: 8, 128>}]} {
    %c0 = arith.constant 0 : index
    %c0_0 = arith.constant 0 : index
    %0 = vector.load %arg1[%c0, %c0_0] : memref<8x16xf32, #tpu.memory_space<vmem>>, vector<8x16xf32>
    %c0_1 = arith.constant 0 : index
    %c0_2 = arith.constant 0 : index
    %1 = vector.load %arg2[%c0_1, %c0_2] : memref<16x128xf32, #tpu.memory_space<vmem>>, vector<16x128xf32>
    %cst = arith.constant dense<0.000000e+00> : vector<8x128xf32>
    %2 = tpu.matmul %0, %1, %cst {dimension_numbers = #tpu.dot_dimension_numbers<[1], [0], [0], [1], [0, 0, 1, 1], [], []>} : vector<8x16xf32>, vector<16x128xf32>, vector<8x128xf32> -> vector<8x128xf32>
    %c0_3 = arith.constant 0 : index
    %c0_4 = arith.constant 0 : index
    %3 = vector.load %arg3[%c0_3, %c0_4] : memref<1x128xf32, #tpu.memory_space<vmem>>, vector<1x128xf32>
    %4 = vector.broadcast %3 : vector<1x128xf32> to vector<8x128xf32>
    %5 = arith.addf %2, %4 : vector<8x128xf32>
    %cst_5 = arith.constant 0.000000e+00 : f32
    %6 = vector.broadcast %cst_5 : f32 to vector<8x128xf32>
    %7 = arith.maximumf %5, %6 : vector<8x128xf32>
    %c0_6 = arith.constant 0 : index
    %c0_7 = arith.constant 0 : index
    %8 = vector.load %arg4[%c0_6, %c0_7] : memref<128x128xf32, #tpu.memory_space<vmem>>, vector<128x128xf32>
    %cst_8 = arith.constant dense<0.000000e+00> : vector<8x128xf32>
    %9 = tpu.matmul %7, %8, %cst_8 {dimension_numbers = #tpu.dot_dimension_numbers<[1], [0], [0], [1], [0, 0, 1, 1], [], []>} : vector<8x128xf32>, vector<128x128xf32>, vector<8x128xf32> -> vector<8x128xf32>
    %c0_9 = arith.constant 0 : index
    %c0_10 = arith.constant 0 : index
    %10 = vector.load %arg5[%c0_9, %c0_10] : memref<1x128xf32, #tpu.memory_space<vmem>>, vector<1x128xf32>
    %11 = vector.broadcast %10 : vector<1x128xf32> to vector<8x128xf32>
    %12 = arith.addf %9, %11 : vector<8x128xf32>
    %c0_11 = arith.constant 0 : index
    %c0_12 = arith.constant 0 : index
    %13 = vector.load %arg6[%c0_11, %c0_12] : memref<128x128xf32, #tpu.memory_space<vmem>>, vector<128x128xf32>
    %cst_13 = arith.constant dense<0.000000e+00> : vector<8x128xf32>
    %14 = tpu.matmul %12, %13, %cst_13 {dimension_numbers = #tpu.dot_dimension_numbers<[1], [0], [0], [1], [0, 0, 1, 1], [], []>} : vector<8x128xf32>, vector<128x128xf32>, vector<8x128xf32> -> vector<8x128xf32>
    %c0_14 = arith.constant 0 : index
    %c0_15 = arith.constant 0 : index
    %15 = vector.load %arg7[%c0_14, %c0_15] : memref<1x128xf32, #tpu.memory_space<vmem>>, vector<1x128xf32>
    %16 = vector.broadcast %15 : vector<1x128xf32> to vector<8x128xf32>
    %17 = arith.addf %14, %16 : vector<8x128xf32>
    %cst_16 = arith.constant 0.000000e+00 : f32
    %18 = vector.broadcast %cst_16 : f32 to vector<8x128xf32>
    %19 = arith.maximumf %17, %18 : vector<8x128xf32>
    %c0_17 = arith.constant 0 : index
    %c0_18 = arith.constant 0 : index
    %20 = vector.load %arg8[%c0_17, %c0_18] : memref<128x128xf32, #tpu.memory_space<vmem>>, vector<128x128xf32>
    %cst_19 = arith.constant dense<0.000000e+00> : vector<8x128xf32>
    %21 = tpu.matmul %19, %20, %cst_19 {dimension_numbers = #tpu.dot_dimension_numbers<[1], [0], [0], [1], [0, 0, 1, 1], [], []>} : vector<8x128xf32>, vector<128x128xf32>, vector<8x128xf32> -> vector<8x128xf32>
    %c0_20 = arith.constant 0 : index
    %c0_21 = arith.constant 0 : index
    %22 = vector.load %arg9[%c0_20, %c0_21] : memref<1x128xf32, #tpu.memory_space<vmem>>, vector<1x128xf32>
    %23 = vector.broadcast %22 : vector<1x128xf32> to vector<8x128xf32>
    %24 = arith.addf %21, %23 : vector<8x128xf32>
    %25 = vector.extract_strided_slice %24 {offsets = [0, 0], sizes = [8, 8], strides = [1, 1]} : vector<8x128xf32> to vector<8x8xf32>
    %26 = vector.extract_strided_slice %24 {offsets = [0, 8], sizes = [8, 1], strides = [1, 1]} : vector<8x128xf32> to vector<8x1xf32>
    %cst_22 = arith.constant dense<0.000000e+00> : vector<8xf32>
    %27 = vector.multi_reduction <add>, %25, %cst_22 [1] : vector<8x8xf32> to vector<8xf32>
    %28 = vector.shape_cast %27 : vector<8xf32> to vector<8x1xf32>
    %cst_23 = arith.constant 8.000000e+00 : f32
    %29 = vector.broadcast %cst_23 : f32 to vector<8x1xf32>
    %30 = arith.divf %28, %29 : vector<8x1xf32>
    %31 = vector.broadcast %30 : vector<8x1xf32> to vector<8x128xf32>
    %32 = arith.subf %24, %31 : vector<8x128xf32>
    %33 = vector.broadcast %26 : vector<8x1xf32> to vector<8x128xf32>
    %34 = arith.addf %33, %32 : vector<8x128xf32>
    %c0_24 = arith.constant 0 : index
    %c0_25 = arith.constant 0 : index
    %35 = vector.load %arg10[%c0_24, %c0_25] : memref<8x128xf32, #tpu.memory_space<vmem>>, vector<8x128xf32>
    tpu.vector_store %arg10[%c0_24, %c0_25], %34 {strides = array<i32>} : memref<8x128xf32, #tpu.memory_space<vmem>>, vector<8x128xf32>,
    return
  }
  func.func @transform_0(%arg0: i32) -> (i32, i32) {
    %c0_i32 = arith.constant 0 : i32
    %c0_i32_0 = arith.constant 0 : i32
    return %arg0, %c0_i32 : i32, i32
  }
  func.func @transform_1(%arg0: i32) -> (i32, i32) {
    %c0_i32 = arith.constant 0 : i32
    %c0_i32_0 = arith.constant 0 : i32
    %c0_i32_1 = arith.constant 0 : i32
    return %c0_i32, %c0_i32_0 : i32, i32
  }
  func.func @transform_2(%arg0: i32) -> (i32, i32) {
    %c0_i32 = arith.constant 0 : i32
    %c0_i32_0 = arith.constant 0 : i32
    %c0_i32_1 = arith.constant 0 : i32
    return %c0_i32, %c0_i32_0 : i32, i32
  }
  func.func @transform_3(%arg0: i32) -> (i32, i32) {
    %c0_i32 = arith.constant 0 : i32
    %c0_i32_0 = arith.constant 0 : i32
    %c0_i32_1 = arith.constant 0 : i32
    return %c0_i32, %c0_i32_0 : i32, i32
  }
  func.func @transform_4(%arg0: i32) -> (i32, i32) {
    %c0_i32 = arith.constant 0 : i32
    %c0_i32_0 = arith.constant 0 : i32
    %c0_i32_1 = arith.constant 0 : i32
    return %c0_i32, %c0_i32_0 : i32, i32
  }
  func.func @transform_5(%arg0: i32) -> (i32, i32) {
    %c0_i32 = arith.constant 0 : i32
    %c0_i32_0 = arith.constant 0 : i32
    %c0_i32_1 = arith.constant 0 : i32
    return %c0_i32, %c0_i32_0 : i32, i32
  }
  func.func @transform_6(%arg0: i32) -> (i32, i32) {
    %c0_i32 = arith.constant 0 : i32
    %c0_i32_0 = arith.constant 0 : i32
    %c0_i32_1 = arith.constant 0 : i32
    return %c0_i32, %c0_i32_0 : i32, i32
  }
  func.func @transform_7(%arg0: i32) -> (i32, i32) {
    %c0_i32 = arith.constant 0 : i32
    %c0_i32_0 = arith.constant 0 : i32
    %c0_i32_1 = arith.constant 0 : i32
    return %c0_i32, %c0_i32_0 : i32, i32
  }
  func.func @transform_8(%arg0: i32) -> (i32, i32) {
    %c0_i32 = arith.constant 0 : i32
    %c0_i32_0 = arith.constant 0 : i32
    %c0_i32_1 = arith.constant 0 : i32
    return %c0_i32, %c0_i32_0 : i32, i32
  }
  func.func @transform_9(%arg0: i32) -> (i32, i32) {
    %c0_i32 = arith.constant 0 : i32
    %c0_i32_0 = arith.constant 0 : i32
    return %arg0, %c0_i32 : i32, i32
  }
}

</mosaic_0001>

<bundles_post_ra>
// kernel: tpu_custom_call.1
= control target key start
LH: loop header
LB: loop body
LE: loop exit
PB: predicated region body
PF: predicated region fallthrough
CT: control target
= control target key end

     0   :  { %14 = vsyncpa [#allocation3], 0  ;;  %s967_s0 = inlined_call_operand.hbm [shape: f32[8,16], index: 0, kind: input, shape index: {}]   ;;  %s968_s1 = inlined_call_operand.hbm [shape: f32[16,128], index: 1, kind: input, shape index: {}]   ;;  %s969_s2 = inlined_call_operand.vmem [shape: f32[1,128], index: 2, kind: input, shape index: {}]   ;;  %s970_s3 = inlined_call_operand.hbm [shape: f32[128,128], index: 3, kind: input, shape index: {}]   ;;  %s971_s4 = inlined_call_operand.vmem [shape: f32[1,128], index: 4, kind: input, shape index: {}]   ;;  %s972_s5 = inlined_call_operand.hbm [shape: f32[128,128], index: 5, kind: input, shape index: {}]   ;;  %s973_s6 = inlined_call_operand.vmem [shape: f32[1,128], index: 6, kind: input, shape index: {}]   ;;  %s974_s7 = inlined_call_operand.hbm [shape: f32[128,128], index: 7, kind: input, shape index: {}]   ;;  %s975_s8 = inlined_call_operand.vmem [shape: f32[1,128], index: 8, kind: input, shape index: {}]   ;;  %s976_s9 = inlined_call_operand.hbm [shape: f32[8,128], index: 9, kind: output, shape index: {}]  }
   0x1   :  { %15 = vsyncpa [#allocation6], 0 }
   0x2   :  { %16 = vsyncpa [#allocation9], 0 }
   0x3   :  { %17 = vsyncpa [#allocation4], 0  ;;  %s806_s30 = smov [#allocation5]  }
   0x4   :  { %s33_s10 = sshll.u32 %s806_s30, 4  ;;  %s34_s10 = int_to_ptr.vmem [resolvable:$true] %s33_s10 }
   0x5   :  { %s686_s11 = scalar_lea.vmem %s34_s10, 256  ;;  %p691_p1 = scmp.lt.s32.totalorder %s34_s10, %s34_s10 }
   0x6   :  { %p687_p0 = scmp.ne.s32.totalorder %s34_s10, %s686_s11  ;;  %p692_p2 = scmp.lt.s32.totalorder %s686_s11, %s686_s11 }
   0x8   :  { %p693_p3 = por %p692_p2, %p691_p1 }
   0xa   :  { %p694_p4 = pnand %p693_p3, %p687_p0 }
   0xc   :  { %697 = shalt.err (!%p694_p4)
}
   0xd   :  { %s807_s12 = smov 128   ;;  %s808_s13 = smov 8  }
   0xe   :  { %39 = dma.hbm_to_vmem [thread:$0]  %s968_s1, 256, %s34_s10, [#allocation6], %s807_s12, %s807_s12, %s808_s13  }
   0xf   :  { %s809_s16 = smov [#allocation8]   ;;  %s810_s18 = smov [#allocation2]  }
  0x10   :  { %s61_s17 = sshll.u32 %s809_s16, 4  ;;  %s24_s19 = sshll.u32 %s810_s18, 4  ;;  %s62_s17 = int_to_ptr.vmem [resolvable:$true] %s61_s17  ;;  %s25_s19 = int_to_ptr.vmem [resolvable:$true] %s24_s19 }
  0x11   :  { %s706_s20 = scalar_lea.vmem %s62_s17, 2048  ;;  %p711_p6 = scmp.lt.s32.totalorder %s62_s17, %s62_s17 }
  0x12   :  { %p707_p5 = scmp.ne.s32.totalorder %s62_s17, %s706_s20  ;;  %p712_p7 = scmp.lt.s32.totalorder %s706_s20, %s706_s20 }
  0x14   :  { %p713_p8 = por %p712_p7, %p711_p6 }
  0x16   :  { %p714_p9 = pnand %p713_p8, %p707_p5 }
  0x18   :  { %717 = shalt.err (!%p714_p9)
}
  0x19   :  { %67 = dma.hbm_to_vmem [thread:$0]  %s972_s5, 2048, %s62_s17, [#allocation9], %s807_s12, %s807_s12, %s808_s13  }
  0x1a   :  { %s726_s1 = scalar_lea.vmem %s25_s19, 128  ;;  %p731_p11 = scmp.lt.s32.totalorder %s25_s19, %s25_s19 }
  0x1b   :  { %p727_p10 = scmp.ne.s32.totalorder %s25_s19, %s726_s1  ;;  %p732_p12 = scmp.lt.s32.totalorder %s726_s1, %s726_s1 }
  0x1d   :  { %p733_p13 = por %p732_p12, %p731_p11 }
  0x1f   :  { %p734_p0 = pnand %p733_p13, %p727_p10 }
  0x21   :  { %737 = shalt.err (!%p734_p0)
}
  0x22   :  { %27 = dma.hbm_to_vmem [thread:$0]  %s967_s0, 128, %s25_s19, [#allocation3]  }
  0x23   :  { %s811_s25 = smov [#allocation7]   ;;  %s812_s27 = smov [#allocation10]  }
  0x24   :  { %s47_s26 = sshll.u32 %s811_s25, 4  ;;  %s75_s28 = sshll.u32 %s812_s27, 4  ;;  %s48_s26 = int_to_ptr.vmem [resolvable:$true] %s47_s26  ;;  %s76_s28 = int_to_ptr.vmem [resolvable:$true] %s75_s28 }
  0x25   :  { %s746_s29 = scalar_lea.vmem %s48_s26, 2048  ;;  %p751_p2 = scmp.lt.s32.totalorder %s48_s26, %s48_s26 }
  0x26   :  { %p747_p1 = scmp.ne.s32.totalorder %s48_s26, %s746_s29  ;;  %p752_p3 = scmp.lt.s32.totalorder %s746_s29, %s746_s29 }
  0x28   :  { %p753_p4 = por %p752_p3, %p751_p2 }
  0x2a   :  { %p754_p5 = pnand %p753_p4, %p747_p1 }
  0x2c   :  { %757 = shalt.err (!%p754_p5)
}
  0x2d   :  { %53 = dma.hbm_to_vmem [thread:$0]  %s970_s3, 2048, %s48_s26, [#allocation6], %s807_s12, %s807_s12, %s808_s13  }
  0x2e   :  { %s766_s0 = scalar_lea.vmem %s76_s28, 2048  ;;  %p771_p7 = scmp.lt.s32.totalorder %s76_s28, %s76_s28 }
  0x2f   :  { %p767_p6 = scmp.ne.s32.totalorder %s76_s28, %s766_s0  ;;  %p772_p8 = scmp.lt.s32.totalorder %s766_s0, %s766_s0 }
  0x31   :  { %p773_p9 = por %p772_p8, %p771_p7 }
  0x33   :  { %p774_p10 = pnand %p773_p9, %p767_p6 }
  0x35   :  { %777 = shalt.err (!%p774_p10)
}
  0x36   :  { %81 = dma.hbm_to_vmem [thread:$0]  %s974_s7, 2048, %s76_s28, [#allocation9], %s807_s12, %s807_s12, %s808_s13  }
  0x37   :  { %798 = dma.done.wait [#allocation3], 128  }
  0x38   :  { %799 = vsyncadd [#allocation3], 4294967168 }
  0x39   :  { %800 = dma.done.wait [#allocation6], 2304  }
  0x3a   :  { %801 = vsyncadd [#allocation6], 4294964992 }
  0x3b   :  { %802 = dma.done.wait [#allocation9], 4096  }
  0x3c   :  { %803 = vsyncadd [#allocation9], 4294963200  ;;  %v813_v0 = vmov 0.0   ;;  %vm814_vm0 = vmmov 0   ;;  %v101_v1 = vld [vmem:[#allocation5 + $0x8] sm:$0xff]  ;;  %v100_v2 = vld [vmem:[#allocation5] sm:$0xff] }
  0x3d   :  { %554 = vmatprep.subr.mxu0 %v813_v0  ;;  %558 = vmatprep.mubr.msk.f32.mxu0 %vm814_vm0, %v813_v0  ;;  %v99_v3 = vld [vmem:[#allocation2] sm:$0xff]  ;;  %vm109_vm1 = vcmask 130048   ;;  %v199_v4 = vld [vmem:[#allocation7 + $0x78] sm:$0xff]  ;;  %v198_v5 = vld [vmem:[#allocation7 + $0x70] sm:$0xff]  ;;  %vm464_vm2 = vcmask 64512  }
  0x3e   :  { %561 = vmatprep.subr.mxu1 %v813_v0  ;;  %593 = vmatprep.mubr.msk.f32.mxu1 %vm814_vm0, %v813_v0  ;;  %v197_v6 = vld [vmem:[#allocation7 + $0x68] sm:$0xff]  ;;  %v196_v7 = vld [vmem:[#allocation7 + $0x60] sm:$0xff]  ;;  %v195_v8 = vld [vmem:[#allocation7 + $0x58] sm:$0xff] }
  0x3f   :  { %555 = vmatpush3.msra.mxu0 %v101_v1  ;;  %562 = vmatpush3.msra.mxu1 %v199_v4  ;;  %v194_v9 = vld [vmem:[#allocation7 + $0x50] sm:$0xff]  ;;  %v193_v10 = vld [vmem:[#allocation7 + $0x48] sm:$0xff]  ;;  %v192_v11 = vld [vmem:[#allocation7 + $0x40] sm:$0xff] }
  0x40   :  { %556 = vmatprep.subr.mxu0 %v813_v0  ;;  %563 = vmatprep.subr.mxu1 %v813_v0  ;;  %v191_v12 = vld [vmem:[#allocation7 + $0x38] sm:$0xff]  ;;  %v190_v13 = vld [vmem:[#allocation7 + $0x30] sm:$0xff]  ;;  %v189_v14 = vld [vmem:[#allocation7 + $0x28] sm:$0xff] }
  0x41   :  { %557 = vmatpush3.msra.mxu0 %v100_v2  ;;  %564 = vmatpush3.msra.mxu1 %v198_v5  ;;  %v188_v15 = vld [vmem:[#allocation7 + $0x20] sm:$0xff]  ;;  %v187_v16 = vld [vmem:[#allocation7 + $0x18] sm:$0xff]  ;;  %v186_v17 = vld [vmem:[#allocation7 + $0x10] sm:$0xff] }
  0x42   :  { %559 = vmatmul.mubr.msk.f32.vlgmr.msra.gmra.mxu0 %vm109_vm1, %v99_v3  ;;  %565 = vmatprep.subr.mxu1 %v813_v0  ;;  %v185_v18 = vld [vmem:[#allocation7 + $0x8] sm:$0xff]  ;;  %v184_v19 = vld [vmem:[#allocation7] sm:$0xff]  ;;  %v292_v20 = vld [vmem:[#allocation8 + $0x78] sm:$0xff]  ;;  %v815_v3 = vmov 8  }
  0x43   :  { %596 = vmatprep.subr.mxu0 %v813_v0  ;;  %566 = vmatpush3.msra.mxu1 %v197_v6  ;;  %v291_v21 = vld [vmem:[#allocation8 + $0x70] sm:$0xff]  ;;  %v290_v22 = vld [vmem:[#allocation8 + $0x68] sm:$0xff]  ;;  %v289_v23 = vld [vmem:[#allocation8 + $0x60] sm:$0xff] }
  0x44   :  { %628 = vmatprep.mubr.msk.f32.mxu0 %vm814_vm0, %v813_v0  ;;  %567 = vmatprep.subr.mxu1 %v813_v0  ;;  %v288_v24 = vld [vmem:[#allocation8 + $0x58] sm:$0xff]  ;;  %v287_v25 = vld [vmem:[#allocation8 + $0x50] sm:$0xff]  ;;  %v286_v26 = vld [vmem:[#allocation8 + $0x48] sm:$0xff] }
  0x45   :  { %568 = vmatpush3.msra.mxu1 %v196_v7  ;;  %597 = vmatpush3.msra.mxu0 %v292_v20  ;;  %v285_v27 = vld [vmem:[#allocation8 + $0x40] sm:$0xff]  ;;  %v284_v28 = vld [vmem:[#allocation8 + $0x38] sm:$0xff]  ;;  %v283_v29 = vld [vmem:[#allocation8 + $0x30] sm:$0xff] }
  0x46   :  { %569 = vmatprep.subr.mxu1 %v813_v0  ;;  %598 = vmatprep.subr.mxu0 %v813_v0  ;;  %v282_v30 = vld [vmem:[#allocation8 + $0x28] sm:$0xff]  ;;  %v281_v31 = vld [vmem:[#allocation8 + $0x20] sm:$0xff]  ;;  %v280_v32 = vld [vmem:[#allocation8 + $0x18] sm:$0xff] }
  0x47   :  { %570 = vmatpush3.msra.mxu1 %v195_v8  ;;  %599 = vmatpush3.msra.mxu0 %v291_v21  ;;  %v279_v33 = vld [vmem:[#allocation8 + $0x10] sm:$0xff]  ;;  %v495_v34 = vld [vmem:[%s969_s2] ss:$0 sm:$0xff]  ;;  %v277_v40 = vld [vmem:[#allocation8] sm:$0xff] }
  0x48   :  { %571 = vmatprep.subr.mxu1 %v813_v0  ;;  %600 = vmatprep.subr.mxu0 %v813_v0  ;;  %v278_v39 = vld [vmem:[#allocation8 + $0x8] sm:$0xff]  ;;  %v386_v41 = vld [vmem:[#allocation10 + $0x78] sm:$0xff]  ;;  %v385_v42 = vld [vmem:[#allocation10 + $0x70] sm:$0xff] }
  0x49   :  { %572 = vmatpush3.msra.mxu1 %v194_v9  ;;  %601 = vmatpush3.msra.mxu0 %v290_v22  ;;  %v384_v43 = vld [vmem:[#allocation10 + $0x68] sm:$0xff]  ;;  %v383_v44 = vld [vmem:[#allocation10 + $0x60] sm:$0xff]  ;;  %v382_v45 = vld [vmem:[#allocation10 + $0x58] sm:$0xff] }
  0x4a   :  { %573 = vmatprep.subr.mxu1 %v813_v0  ;;  %602 = vmatprep.subr.mxu0 %v813_v0  ;;  %v381_v46 = vld [vmem:[#allocation10 + $0x50] sm:$0xff]  ;;  %v380_v47 = vld [vmem:[#allocation10 + $0x48] sm:$0xff]  ;;  %v379_v48 = vld [vmem:[#allocation10 + $0x40] sm:$0xff] }
  0x4b   :  { %574 = vmatpush3.msra.mxu1 %v193_v10  ;;  %603 = vmatpush3.msra.mxu0 %v289_v23  ;;  %v378_v49 = vld [vmem:[#allocation10 + $0x38] sm:$0xff]  ;;  %v377_v50 = vld [vmem:[#allocation10 + $0x30] sm:$0xff]  ;;  %v376_v51 = vld [vmem:[#allocation10 + $0x28] sm:$0xff] }
  0x4c   :  { %575 = vmatprep.subr.mxu1 %v813_v0  ;;  %604 = vmatprep.subr.mxu0 %v813_v0  ;;  %v375_v52 = vld [vmem:[#allocation10 + $0x20] sm:$0xff]  ;;  %v374_v53 = vld [vmem:[#allocation10 + $0x18] sm:$0xff]  ;;  %v497_v54 = vld [vmem:[%s971_s4] ss:$0 sm:$0xff] }
  0x4d   :  { %576 = vmatpush3.msra.mxu1 %v192_v11  ;;  %605 = vmatpush3.msra.mxu0 %v288_v24  ;;  %v373_v58 = vld [vmem:[#allocation10 + $0x10] sm:$0xff]  ;;  %v372_v59 = vld [vmem:[#allocation10 + $0x8] sm:$0xff]  ;;  %v371_v60 = vld [vmem:[#allocation10] sm:$0xff] }
  0x4e   :  { %577 = vmatprep.subr.mxu1 %v813_v0  ;;  %606 = vmatprep.subr.mxu0 %v813_v0  ;;  %v498_v61 = vld [vmem:[%s973_s6] ss:$0 sm:$0xff]  ;;  %s816_s6 = smov [#allocation11]  }
  0x4f   :  { %578 = vmatpush3.msra.mxu1 %v191_v12  ;;  %607 = vmatpush3.msra.mxu0 %v287_v25  ;;  %v499_v4 = vld [vmem:[%s975_s8] ss:$0 sm:$0xff]  ;;  %s484_s16 = sshll.u32 %s816_s6, 4  ;;  %s485_s16 = int_to_ptr.vmem [resolvable:$true] %s484_s16 }
  0x50   :  { %579 = vmatprep.subr.mxu1 %v813_v0  ;;  %608 = vmatprep.subr.mxu0 %v813_v0  ;;  %s778_s17 = scalar_lea.vmem %s485_s16, 128  ;;  %p783_p12 = scmp.lt.s32.totalorder %s485_s16, %s485_s16 }
  0x51   :  { %580 = vmatpush3.msra.mxu1 %v190_v13  ;;  %609 = vmatpush3.msra.mxu0 %v286_v26  ;;  %p779_p11 = scmp.ne.s32.totalorder %s485_s16, %s778_s17  ;;  %p784_p13 = scmp.lt.s32.totalorder %s778_s17, %s778_s17 }
  0x52   :  { %581 = vmatprep.subr.mxu1 %v813_v0  ;;  %610 = vmatprep.subr.mxu0 %v813_v0 }
  0x53   :  { %582 = vmatpush3.msra.mxu1 %v189_v14  ;;  %611 = vmatpush3.msra.mxu0 %v285_v27  ;;  %p785_p0 = por %p784_p13, %p783_p12 }
  0x54   :  { %583 = vmatprep.subr.mxu1 %v813_v0  ;;  %612 = vmatprep.subr.mxu0 %v813_v0 }
  0x55   :  { %584 = vmatpush3.msra.mxu1 %v188_v15  ;;  %613 = vmatpush3.msra.mxu0 %v284_v28  ;;  %p786_p1 = pnand %p785_p0, %p779_p11 }
  0x56   :  { %585 = vmatprep.subr.mxu1 %v813_v0  ;;  %614 = vmatprep.subr.mxu0 %v813_v0 }
  0x57   :  { %586 = vmatpush3.msra.mxu1 %v187_v16  ;;  %615 = vmatpush3.msra.mxu0 %v283_v29 }
  0x58   :  { %587 = vmatprep.subr.mxu1 %v813_v0  ;;  %616 = vmatprep.subr.mxu0 %v813_v0 }
  0x59   :  { %588 = vmatpush3.msra.mxu1 %v186_v17  ;;  %617 = vmatpush3.msra.mxu0 %v282_v30 }
  0x5a   :  { %589 = vmatprep.subr.mxu1 %v813_v0  ;;  %618 = vmatprep.subr.mxu0 %v813_v0 }
  0x5b   :  { %590 = vmatpush3.msra.mxu1 %v185_v18  ;;  %619 = vmatpush3.msra.mxu0 %v281_v31 }
  0x5c   :  { %591 = vmatprep.subr.mxu1 %v813_v0  ;;  %620 = vmatprep.subr.mxu0 %v813_v0 }
  0x5d   :  { %592 = vmatpush3.msra.mxu1 %v184_v19  ;;  %621 = vmatpush3.msra.mxu0 %v280_v32 }
  0x5e   :  { %631 = vmatprep.subr.mxu1 %v813_v0  ;;  %622 = vmatprep.subr.mxu0 %v813_v0 }
  0x5f   :  { %623 = vmatpush3.msra.mxu0 %v279_v33  ;;  %677 = vset.pattern.permute.xlu0 %v815_v3 }
  0x60   :  { %624 = vmatprep.subr.mxu0 %v813_v0 }
  0x61   :  { %625 = vmatpush3.msra.mxu0 %v278_v39 }
  0x62   :  { %626 = vmatprep.subr.mxu0 %v813_v0 }
  0x63   :  { %627 = vmatpush3.msra.mxu0 %v277_v40 }
 0x102   :  { %v179_v35 = vpop.f32.mrf.mxu0 }
 0x103   :  { %v180_v36 = vadd.f32 %v495_v34, %v179_v35 }
 0x104   :  { %v560_v37 = vpop.f32.mrf.mxu0 }
 0x105   :  { %v183_v38 = vmax.f32 %v180_v36, 0.0 }
 0x107   :  { %594 = vmatmul.mubr.f32.vlgmr.msra.gmra.mxu1 %v183_v38 }
 0x108   :  { %663 = vmatprep.mubr.msk.f32.mxu1 %vm814_vm0, %v813_v0  ;;  %632 = vmatpush3.msra.mxu1 %v386_v41 }
 0x109   :  { %633 = vmatprep.subr.mxu1 %v813_v0 }
 0x10a   :  { %634 = vmatpush3.msra.mxu1 %v385_v42 }
 0x10b   :  { %635 = vmatprep.subr.mxu1 %v813_v0 }
 0x10c   :  { %636 = vmatpush3.msra.mxu1 %v384_v43 }
 0x10d   :  { %637 = vmatprep.subr.mxu1 %v813_v0 }
 0x10e   :  { %638 = vmatpush3.msra.mxu1 %v383_v44 }
 0x10f   :  { %639 = vmatprep.subr.mxu1 %v813_v0 }
 0x110   :  { %640 = vmatpush3.msra.mxu1 %v382_v45 }
 0x111   :  { %641 = vmatprep.subr.mxu1 %v813_v0 }
 0x112   :  { %642 = vmatpush3.msra.mxu1 %v381_v46 }
 0x113   :  { %643 = vmatprep.subr.mxu1 %v813_v0 }
 0x114   :  { %644 = vmatpush3.msra.mxu1 %v380_v47 }
 0x115   :  { %645 = vmatprep.subr.mxu1 %v813_v0 }
 0x116   :  { %646 = vmatpush3.msra.mxu1 %v379_v48 }
 0x117   :  { %647 = vmatprep.subr.mxu1 %v813_v0 }
 0x118   :  { %648 = vmatpush3.msra.mxu1 %v378_v49 }
 0x119   :  { %649 = vmatprep.subr.mxu1 %v813_v0 }
 0x11a   :  { %650 = vmatpush3.msra.mxu1 %v377_v50 }
 0x11b   :  { %651 = vmatprep.subr.mxu1 %v813_v0 }
 0x11c   :  { %652 = vmatpush3.msra.mxu1 %v376_v51 }
 0x11d   :  { %653 = vmatprep.subr.mxu1 %v813_v0 }
 0x11e   :  { %654 = vmatpush3.msra.mxu1 %v375_v52 }
 0x11f   :  { %655 = vmatprep.subr.mxu1 %v813_v0 }
 0x120   :  { %656 = vmatpush3.msra.mxu1 %v374_v53 }
 0x121   :  { %657 = vmatprep.subr.mxu1 %v813_v0 }
 0x122   :  { %658 = vmatpush3.msra.mxu1 %v373_v58 }
 0x123   :  { %659 = vmatprep.subr.mxu1 %v813_v0 }
 0x124   :  { %660 = vmatpush3.msra.mxu1 %v372_v59 }
 0x125   :  { %661 = vmatprep.subr.mxu1 %v813_v0 }
 0x126   :  { %662 = vmatpush3.msra.mxu1 %v371_v60 }
 0x1c7   :  { %v273_v55 = vpop.f32.mrf.mxu1 }
 0x1c8   :  { %v274_v56 = vadd.f32 %v497_v54, %v273_v55 }
 0x1c9   :  { %v595_v57 = vpop.f32.mrf.mxu1 }
 0x1ca   :  { %629 = vmatmul.mubr.f32.vlgmr.msra.gmra.mxu0 %v274_v56 }
 0x28a   :  { %v366_v62 = vpop.f32.mrf.mxu0 }
 0x28b   :  { %v367_v63 = vadd.f32 %v498_v61, %v366_v62 }
 0x28c   :  { %v630_v1 = vpop.f32.mrf.mxu0 }
 0x28d   :  { %v370_v2 = vmax.f32 %v367_v63, 0.0 }
 0x28f   :  { %664 = vmatmul.mubr.f32.vlgmr.msra.gmra.mxu1 %v370_v2 }
 0x34f   :  { %v460_v5 = vpop.f32.mrf.mxu1 }
 0x350   :  { %v461_v0 = vadd.f32 %v499_v4, %v460_v5 }
 0x351   :  { %v665_v6 = vpop.f32.mrf.mxu1 }
 0x352   :  { %v465_v7 = vsel %vm464_vm2, %v461_v0, 0.0 }
 0x353   :  { %466 = vadd.xlane.f32.xlu0 %v465_v7 }
 0x369   :  { %473 = vperm.xlu0 %677, %v461_v0  }
 0x3dc   :  { %v467_v8 = vpop.xlane.xlu0 %466 }
 0x3dd   :  { %v469_v9 = vmul.f32 0.125, %v467_v8 }
 0x3df   :  { %v470_v10 = vsub.f32 %v461_v0, %v469_v9 }
 0x3e4   :  { %v474_v11 = vpop.permute.xlu0 %473 }
 0x3e5   :  { %v476_v12 = vadd.f32 %v474_v11, %v470_v10 }
 0x3e7   :  { %477 = vst [vmem:[#allocation11] sm:$0xff] %v476_v12 }
 0x3e8   :  { %789 = shalt.err (!%p786_p1)
}
 0x3e9   :  { %487 = dma.vmem_to_hbm [thread:$0]  %s485_s16, 128, %s976_s9, [#allocation4]  }
 0x3ea   :  { %804 = dma.done.wait [#allocation4], 128  }
 0x3eb   :  { %805 = vsyncadd [#allocation4], 4294967168 }
 0x3ec   :  { %491 = vsyncpa [#allocation3], 1 }
 0x3ed   :  { %492 = vsyncpa [#allocation6], 1 }
 0x3ee   :  { %493 = vsyncpa [#allocation9], 1 }
 0x3ef   :  { %494 = vsyncpa [#allocation4], 1 }

</bundles_post_ra>
